<compile_context>
chip_gen: v6e
topology: v6e:2x2x1
jax: 0.10.0
libtpu: 0.0.40
codegen_flags: <defaults>
</compile_context>

<pallas_src>
import math
from functools import partial

import jax
import jax.numpy as jnp
from jax.experimental import pallas as pl
from jax.experimental.pallas import tpu as pltpu


LANES = 128


def _has_bf16_valu():
    """True on chips with a bf16 VPU (v6e / v7x); False on v2-v5 (incl. v5e)."""
    try:
        kind = jax.devices()[0].device_kind.lower()
    except Exception:
        return False
    return not any(old in kind for old in ("v2", "v3", "v4", "v5"))


def _vmem_plan():
    """(per_buffer_bytes, vmem_limit_bytes): generation-aware with safe fallback."""
    per_buffer, limit = 4 * 1024 * 1024, 32 * 1024 * 1024   # safe on v7x (64 MiB VMEM)
    try:
        cap = int(getattr(pltpu.get_tpu_info(), "vmem_capacity_bytes", 0))
    except Exception:
        cap = 0
    if cap >= 96 * 1024 * 1024:                              # v5e / v6e: 128 MiB VMEM
        per_buffer, limit = 8 * 1024 * 1024, 64 * 1024 * 1024
    return per_buffer, limit


def _pick_tile_rows(R, W, itemsize, per_buffer_bytes):
    """Rows per grid block: balanced multi-block grid, each buffer <= per_buffer."""
    cap = per_buffer_bytes // (W * itemsize)
    cap = max(8, (cap // 8) * 8)
    small = min(512, cap)
    if R <= max(64, small):
        return R                              # tiny work: single full-extent block
    tile = -(-R // 4)                         # target ~4 blocks (2 per TC on v7x)
    tile = ((tile + 31) // 32) * 32           # sublane/packing-friendly multiple
    tile = max(min(tile, cap), small)         # clamp into [small, cap]
    return R if tile >= R else tile


def _sigmoid_modulator_kernel(scalars_ref, x_ref, slope_ref, shift_ref, o_ref,
                              *, narrow_mul):
    # scalars_ref (SMEM, f32[2]): [0] = step value t, [1] = scaler
    t = scalars_ref[0]
    scaler = scalars_ref[1]
    # Modulation vector for this step: sigmoid(slope * (t - shift*scaler)) -> (1, W).
    # Recomputed per grid step on purpose: W EUP exps are effectively free and it
    # avoids scratch-init pl.when logic that could misfire under megacore splits.
    z = slope_ref[...] * (t - shift_ref[...] * scaler)
    mod = 1.0 / (1.0 + jnp.exp(-z))                           # f32, (1, W)
    if narrow_mul:
        # bf16 VALU path (v6e / v7x): no per-vreg unpack/pack for the big multiply.
        o_ref[...] = x_ref[...] * mod.astype(o_ref.dtype)
    else:
        # f32-widen path: correct everywhere, required on v5e (no bf16 VPU).
        o_ref[...] = (x_ref[...].astype(jnp.float32) * mod).astype(o_ref.dtype)


def _run_packed(scalars, x_packed, slope_w, shift_w, out_dtype, narrow_mul):
    R, W = x_packed.shape
    itemsize = jnp.dtype(out_dtype).itemsize
    per_buffer, vmem_limit = _vmem_plan()
    tile_r = _pick_tile_rows(R, W, itemsize, per_buffer)
    grid_steps = pl.cdiv(R, tile_r)
    cost = pl.CostEstimate(
        flops=R * W,                                   # one multiply per element
        transcendentals=grid_steps * W,                # per-block exp of mod vector
        bytes_accessed=2 * R * W * itemsize + 2 * W * 4,
    )
    return pl.pallas_call(
        partial(_sigmoid_modulator_kernel, narrow_mul=narrow_mul),
        out_shape=jax.ShapeDtypeStruct((R, W), out_dtype),
        grid=(grid_steps,),
        in_specs=[
            pl.BlockSpec(memory_space=pltpu.MemorySpace.SMEM),   # scalars (t, scaler)
            pl.BlockSpec((tile_r, W), lambda i: (i, 0)),         # X row block
            pl.BlockSpec((1, W), lambda i: (0, 0)),              # slope (lane-wide)
            pl.BlockSpec((1, W), lambda i: (0, 0)),              # shift (lane-wide)
        ],
        out_specs=pl.BlockSpec((tile_r, W), lambda i: (i, 0)),
        compiler_params=pltpu.CompilerParams(
            dimension_semantics=("parallel",),     # v7x: row blocks split over 2 TCs
            vmem_limit_bytes=vmem_limit,
        ),
        cost_estimate=cost,
    )(scalars, x_packed, slope_w, shift_w)


def _mod_vector(steps, slope, shift, scaler):
    """Plain-jnp modulation row sigmoid(slope*(t - shift*scaler)) -> (1, N) f32."""
    t = jnp.asarray(steps, jnp.float32)
    z = slope.reshape(1, -1).astype(jnp.float32) * (
        t - shift.reshape(1, -1).astype(jnp.float32) * scaler)
    return 1.0 / (1.0 + jnp.exp(-z))


def sigmoid_modulator(X, steps, slope, shift, window_len, scale=True):
    """X: (B, C, N), slope/shift: (1, N). Returns (B, C, 1, N) in X.dtype.

    `steps` must be a valid step index in [0, window_len) for exact parity with
    the PyTorch module (which indexes functions[steps]).
    """
    B, C, N = X.shape
    dtype = X.dtype
    rows = B * C
    scaler = float(window_len - 1) if scale else 1.0

    # Lane-dense repacking: fold g rows into the 128-lane axis so stores are
    # full-width unmasked vst for any N (W = g*N is always a multiple of 128).
    g = math.lcm(N, LANES) // N
    W = g * N

    x2d = X.reshape(rows, N)
    slope_w = jnp.tile(slope.reshape(1, N).astype(jnp.float32), (1, g))
    shift_w = jnp.tile(shift.reshape(1, N).astype(jnp.float32), (1, g))
    scalars = jnp.stack([jnp.asarray(steps, jnp.float32),
                         jnp.asarray(scaler, jnp.float32)])
    narrow_mul = (dtype == jnp.bfloat16) and _has_bf16_valu()

    rows_main = (rows // g) * g

    if rows_main == 0:
        # Tiny input (< g rows): pad up to one packed row so the kernel still
        # runs; the copies involved are a few hundred bytes.
        x_packed = jnp.pad(x2d, ((0, g - rows), (0, 0))).reshape(1, W)
        out = _run_packed(scalars, x_packed, slope_w, shift_w, dtype, narrow_mul)
        return out.reshape(g, N)[:rows].reshape(B, C, 1, N)

    # Main prefix through the packed kernel: no whole-array pad / slice copies.
    x_packed = x2d[:rows_main].reshape(rows_main // g, W)
    out_main = _run_packed(scalars, x_packed, slope_w, shift_w, dtype, narrow_mul)
    out_main = out_main.reshape(rows_main, N)

    if rows_main == rows:
        return out_main.reshape(B, C, 1, N)

    # Ragged tail (< g rows): trivial plain-jnp epilogue, then one stitch.
    # TODO(synk): the concatenate is one extra pass over the output; removing it
    # entirely would require a masked final block or output aliasing.
    mod = _mod_vector(steps, slope, shift, scaler)
    tail = (x2d[rows_main:].astype(jnp.float32) * mod).astype(dtype)
    out2d = jnp.concatenate([out_main, tail], axis=0)
    return out2d.reshape(B, C, 1, N)


def reference(X, steps, slope, shift, window_len, scale=True):
    t = jnp.arange(window_len, dtype=jnp.float32).reshape(-1, 1)
    scaler = (t.max() - t.min()) if scale else jnp.float32(1.0)
    functions = 1.0 / (1.0 + jnp.exp(-slope * (t - shift * scaler)))  # (window_len, N)
    return (X[:, :, None, :].astype(jnp.float32) * functions[steps]).astype(X.dtype)


def _check(B, C, window_len, num_sigmoids, steps, scale, key):
    k_slope, k_shift, k_x = jax.random.split(key, 3)
    # deterministic parameter init (matches the module __init__ distributions)
    slope = jax.random.normal(k_slope, (1, num_sigmoids), jnp.float32) / window_len
    shift = jax.random.uniform(k_shift, (1, num_sigmoids), jnp.float32,
                               minval=-1.0, maxval=1.0)
    X = jax.random.normal(k_x, (B, C, num_sigmoids), jnp.float32)

    out = sigmoid_modulator(X, steps, slope, shift, window_len, scale)
    out = jax.block_until_ready(out)

    ref = reference(X, steps, slope, shift, window_len, scale)
    assert out.shape == (B, C, 1, num_sigmoids), out.shape
    assert jnp.allclose(out, ref, atol=1e-5, rtol=1e-5), "mismatch vs reference"


if __name__ == "__main__":
    key = jax.random.PRNGKey(0)
    k1, k2, k3 = jax.random.split(key, 3)

    # module-sized demo (B=2, C=4, window_len=16, num_sigmoids=8, steps=5):
    # rows < g, goes through the tiny single-block packed path.
    _check(B=2, C=4, window_len=16, num_sigmoids=8, steps=5, scale=True, key=k1)

    # aligned rows (16384 % 16 == 0): pure kernel path, balanced 2-block grid.
    _check(B=4, C=4096, window_len=16, num_sigmoids=8, steps=3, scale=True, key=k2)

    # ragged rows (33000 % 16 != 0): packed prefix (2062 packed rows, 4-block
    # grid with a masked edge block) plus an 8-row plain-jnp tail.
    _check(B=3, C=11000, window_len=16, num_sigmoids=8, steps=11, scale=True, key=k3)

    print("KERNEL_OK")
</pallas_src>

<mosaic_0001>
module attributes {stable_mosaic.version = 11 : i64} {
  func.func @_sigmoid_modulator_kernel(%arg0: i32, %arg1: memref<2xf32, #tpu.memory_space<smem>>, %arg2: memref<1x128xf32, #tpu.memory_space<vmem>>, %arg3: memref<1x128xf32, #tpu.memory_space<vmem>>, %arg4: memref<1x128xf32, #tpu.memory_space<vmem>>, %arg5: memref<1x128xf32, #tpu.memory_space<vmem>>) attributes {dimension_semantics = [#tpu.dimension_semantics<parallel>], iteration_bounds = array<i64: 1>, scalar_prefetch = 0 : i64, scratch_operands = 0 : i64, tpu.core_type = #tpu.core_type<tc>, window_params = [{transform_indices = @transform_0, window_bounds = array<i64: 2>}, {transform_indices = @transform_1, window_bounds = array<i64: 1, 128>}, {pipeline_mode = #tpu.pipeline_mode<synchronous>, transform_indices = @transform_2, window_bounds = array<i64: 1, 128>}, {pipeline_mode = #tpu.pipeline_mode<synchronous>, transform_indices = @transform_3, window_bounds = array<i64: 1, 128>}, {transform_indices = @transform_4, window_bounds = array<i64: 1, 128>}]} {
    %c0 = arith.constant 0 : index
    %0 = memref.load %arg1[%c0] : memref<2xf32, #tpu.memory_space<smem>>
    %c1 = arith.constant 1 : index
    %1 = memref.load %arg1[%c1] : memref<2xf32, #tpu.memory_space<smem>>
    %c0_0 = arith.constant 0 : index
    %c0_1 = arith.constant 0 : index
    %2 = vector.load %arg3[%c0_0, %c0_1] : memref<1x128xf32, #tpu.memory_space<vmem>>, vector<1x128xf32>
    %c0_2 = arith.constant 0 : index
    %c0_3 = arith.constant 0 : index
    %3 = vector.load %arg4[%c0_2, %c0_3] : memref<1x128xf32, #tpu.memory_space<vmem>>, vector<1x128xf32>
    %4 = vector.broadcast %1 : f32 to vector<1x128xf32>
    %5 = arith.mulf %3, %4 : vector<1x128xf32>
    %6 = vector.broadcast %0 : f32 to vector<1x128xf32>
    %7 = arith.subf %6, %5 : vector<1x128xf32>
    %8 = arith.mulf %2, %7 : vector<1x128xf32>
    %cst = arith.constant 0.000000e+00 : f32
    %9 = vector.broadcast %cst : f32 to vector<1x128xf32>
    %10 = arith.subf %9, %8 : vector<1x128xf32>
    %11 = math.exp %10 : vector<1x128xf32>
    %cst_4 = arith.constant 1.000000e+00 : f32
    %12 = vector.broadcast %cst_4 : f32 to vector<1x128xf32>
    %13 = arith.addf %12, %11 : vector<1x128xf32>
    %cst_5 = arith.constant 1.000000e+00 : f32
    %14 = vector.broadcast %cst_5 : f32 to vector<1x128xf32>
    %15 = arith.divf %14, %13 : vector<1x128xf32>
    %c0_6 = arith.constant 0 : index
    %c0_7 = arith.constant 0 : index
    %16 = vector.load %arg2[%c0_6, %c0_7] : memref<1x128xf32, #tpu.memory_space<vmem>>, vector<1x128xf32>
    %17 = arith.mulf %16, %15 : vector<1x128xf32>
    %c0_8 = arith.constant 0 : index
    %c0_9 = arith.constant 0 : index
    %18 = vector.load %arg5[%c0_8, %c0_9] : memref<1x128xf32, #tpu.memory_space<vmem>>, vector<1x128xf32>
    tpu.vector_store %arg5[%c0_8, %c0_9], %17 {strides = array<i32>} : memref<1x128xf32, #tpu.memory_space<vmem>>, vector<1x128xf32>,
    return
  }
  func.func @transform_0(%arg0: i32) -> i32 {
    %c0_i32 = arith.constant 0 : i32
    %c0_i32_0 = arith.constant 0 : i32
    return %c0_i32 : i32
  }
  func.func @transform_1(%arg0: i32) -> (i32, i32) {
    %c0_i32 = arith.constant 0 : i32
    %c0_i32_0 = arith.constant 0 : i32
    return %arg0, %c0_i32 : i32, i32
  }
  func.func @transform_2(%arg0: i32) -> (i32, i32) {
    %c0_i32 = arith.constant 0 : i32
    %c0_i32_0 = arith.constant 0 : i32
    %c0_i32_1 = arith.constant 0 : i32
    return %c0_i32, %c0_i32_0 : i32, i32
  }
  func.func @transform_3(%arg0: i32) -> (i32, i32) {
    %c0_i32 = arith.constant 0 : i32
    %c0_i32_0 = arith.constant 0 : i32
    %c0_i32_1 = arith.constant 0 : i32
    return %c0_i32, %c0_i32_0 : i32, i32
  }
  func.func @transform_4(%arg0: i32) -> (i32, i32) {
    %c0_i32 = arith.constant 0 : i32
    %c0_i32_0 = arith.constant 0 : i32
    return %arg0, %c0_i32 : i32, i32
  }
}

</mosaic_0001>

<bundles_post_ra>
// kernel: tpu_custom_call.1
= control target key start
LH: loop header
LB: loop body
LE: loop exit
PB: predicated region body
PF: predicated region fallthrough
CT: control target
= control target key end

     0   :  { %9 = vsyncpa [#allocation4], 0  ;;  %s143_s0 = inlined_call_operand.hbm [shape: f32[2], index: 0, kind: input, shape index: {}]   ;;  %s144_s1 = inlined_call_operand.vmem [shape: f32[1,128], index: 1, kind: input, shape index: {}]   ;;  %s145_s2 = inlined_call_operand.vmem [shape: f32[1,128], index: 2, kind: input, shape index: {}]   ;;  %s146_s3 = inlined_call_operand.vmem [shape: f32[1,128], index: 3, kind: input, shape index: {}]   ;;  %s147_s4 = inlined_call_operand.hbm [shape: f32[1,128], index: 4, kind: output, shape index: {}]  }
   0x1   :  { %10 = vsyncpa [#allocation3], 0  ;;  %s101_s15 = smov [#allocation2]  }
   0x2   :  { %18 = dma.hbm_to_smem %s143_s0, 16, %s101_s15, [#allocation4]  }
   0x3   :  { %97 = dma.done.wait [#allocation4], 16  }
   0x4   :  { %98 = vsyncadd [#allocation4], 4294967280 }
   0x5   :  { %28 = sfence }
   0x6   :  { %s29_s18 = sld [smem:[#allocation2]]  ;;  %v32_v0 = vld [vmem:[%s146_s3] sm:$0x1]  ;;  %s102_s3 = smov [#allocation5]  }
   0x7   :  { %s62_s19 = sld [smem:[#allocation2 + $0x1]]  ;;  %v31_v4 = vld [vmem:[%s145_s2] sm:$0x1]  ;;  %s53_s25 = sshll.u32 %s102_s3, 4  ;;  %s54_s25 = int_to_ptr.vmem [resolvable:$true] %s53_s25 }
   0x8   :  { %v44_v11 = vld [vmem:[%s144_s1] sm:$0x1]  ;;  %s77_s26 = scalar_lea.vmem %s54_s25, 16  ;;  %s81_s2 = scalar_lea.vmem %s54_s25, 32 }
   0x9   :  { %p78_p0 = scmp.ne.s32.totalorder %s54_s25, %s77_s26  ;;  %p82_p1 = scmp.lt.s32.totalorder %s54_s25, %s54_s25 }
   0xa   :  { %p83_p2 = scmp.lt.s32.totalorder %s81_s2, %s77_s26 }
   0xc   :  { %v35_v2 = vstv %s29_s18  ;;  %p84_p3 = por %p83_p2, %p82_p1 }
   0xd   :  { %v33_v1 = vstv %s62_s19 }
   0xe   :  { %v34_v3 = vmul.f32 %v33_v1, %v32_v0  ;;  %p85_p4 = pnand %p84_p3, %p78_p0 }
  0x10   :  { %v36_v5 = vsub.f32 %v35_v2, %v34_v3 }
  0x12   :  { %v37_v6 = vmul.f32 %v36_v5, %v31_v4 }
  0x14   :  { %v38_v7 = vsub.f32 0.0, %v37_v6 }
  0x16   :  { %v39_v8 = vmul.f32 1.442695, %v38_v7 }
  0x18   :  { %65 = vpow2.f32 %v39_v8 }
  0x25   :  { %v66_v9 = vpop.eup %65 }
  0x26   :  { %v41_v10 = vadd.f32 1.0, %v66_v9 }
  0x28   :  { %67 = vrcp.f32 %v41_v10 }
  0x35   :  { %v68_v12 = vpop.eup %67 }
  0x36   :  { %v45_v13 = vmul.f32 %v68_v12, %v44_v11 }
  0x38   :  { %46 = vst [vmem:[#allocation5] sm:$0x1] %v45_v13 }
  0x39   :  { %88 = shalt.err (!%p85_p4)
}
  0x3a   :  { %56 = dma.vmem_to_hbm [thread:$0]  %s54_s25, 16, %s147_s4, [#allocation3]  }
  0x3b   :  { %99 = dma.done.wait [#allocation3], 16  }
  0x3c   :  { %100 = vsyncadd [#allocation3], 4294967280 }
  0x3d   :  { %60 = vsyncpa [#allocation3], 1 }
  0x3e   :  { %61 = vsyncpa [#allocation4], 1 }

</bundles_post_ra>
